<compile_context>
chip_gen: v6e
topology: v6e:2x2x1
jax: 0.10.0
libtpu: 0.0.40
codegen_flags: <defaults>
</compile_context>

<pallas_src>
import functools
import math

import jax
import jax.numpy as jnp
from jax import lax
from jax.experimental import pallas as pl
from jax.experimental.pallas import tpu as pltpu


# ------------------------------- the kernel --------------------------------

def mobilebert_attention_kernel(
    q_ref, k_ref, v_ref, li_ref, mask_ref, w_ref, b_ref,   # inputs
    o_ref,                                                  # output
    q_sc, k_sc, v_sc, ctx_sc,                               # VMEM scratch
    *, num_heads, head_dim, true_hidden, hidden):
  th = true_hidden
  hd = head_dim
  nh = num_heads
  a = nh * hd                       # all_head_size (== true_hidden_size)
  bf16 = jnp.bfloat16
  inv_sqrt_hd = 1.0 / math.sqrt(hd)

  # ---- packed parameters (VMEM-resident across the whole grid) -------------
  # w_ref rows: [ q_w(th) | k_w(th) | v_w(hidden) | out_w(a) ]   (bf16)
  w_q = w_ref[0:th, :]
  w_k = w_ref[th:2 * th, :]
  w_v = w_ref[2 * th:2 * th + hidden, :]
  w_o = w_ref[2 * th + hidden:2 * th + hidden + a, :]
  # b_ref rows: q_b, k_b, v_b, out_b, nonorm_w, nonorm_b         (f32)
  b_q, b_k, b_v = b_ref[0:1, :], b_ref[1:2, :], b_ref[2:3, :]
  b_o, nn_w, nn_b = b_ref[3:4, :], b_ref[4:5, :], b_ref[5:6, :]

  # ---- K / V projections: once per batch element ---------------------------
  # The q-tile grid axis is innermost ("arbitrary"); k_sc / v_sc persist
  # across q-tiles of the same batch element.
  @pl.when(pl.program_id(1) == 0)
  def _():
    k_in = k_ref[...].astype(bf16)                       # [S, TH]
    v_in = v_ref[...].astype(bf16)                       # [S, H]
    k_sc[...] = (jnp.dot(k_in, w_k, preferred_element_type=jnp.float32)
                 + b_k).astype(bf16)                     # [S, A]
    v_sc[...] = (jnp.dot(v_in, w_v, preferred_element_type=jnp.float32)
                 + b_v).astype(bf16)                     # [S, A]

  # ---- Q projection for this tile; fold 1/sqrt(hd) into q (A lanes, not S) --
  q_in = q_ref[...].astype(bf16)                          # [tq, TH]
  q = jnp.dot(q_in, w_q, preferred_element_type=jnp.float32) + b_q
  q_sc[...] = (q * inv_sqrt_hd).astype(bf16)              # [tq, A]

  mask = mask_ref[...]                                    # [1, S] additive f32

  # ---- per-head attention over lane slices of the resident slabs -----------
  # nh is small and static -> unrolled Python loop; slices are static lane
  # windows, context goes straight into its own lane slice (no concats).
  for h in range(nh):
    sl = slice(h * hd, (h + 1) * hd)
    qh = q_sc[:, sl]                                      # [tq, HD] bf16
    kh = k_sc[:, sl]                                      # [S,  HD] bf16
    vh = v_sc[:, sl]                                      # [S,  HD] bf16
    # scores = q . k^T  (contract the HD dim of both; no explicit transpose)
    s = lax.dot_general(qh, kh, (((1,), (1,)), ((), ())),
                        preferred_element_type=jnp.float32)   # [tq, S]
    s = s + mask
    # numerically stable softmax in f32; reciprocal goes to the EUP slot
    s = s - jnp.max(s, axis=-1, keepdims=True)
    p = jnp.exp(s)
    p = p * pl.reciprocal(jnp.sum(p, axis=-1, keepdims=True), approx=True)
    ctx_sc[:, sl] = jnp.dot(p.astype(bf16), vh,
                            preferred_element_type=jnp.float32).astype(bf16)

  # ---- MobileBertSelfOutput: dense + NoNorm(x + layer_input) ---------------
  out = jnp.dot(ctx_sc[...], w_o, preferred_element_type=jnp.float32) + b_o
  out = (out + li_ref[...]) * nn_w + nn_b                 # NoNorm, residual
  o_ref[...] = out                                        # [tq, TH] f32


# ------------------------------ host wrapper --------------------------------

def mobilebert_attention(query_tensor, key_tensor, value_tensor, layer_input,
                         attention_mask, params, *, num_heads, q_tile=None):
  bsz, seq, th = query_tensor.shape
  hidden = value_tensor.shape[-1]
  head_dim = th // num_heads
  a = num_heads * head_dim
  assert a == th, "all_head_size must equal true_hidden_size"
  # Keep packed-slab row offsets on the bf16 (16,128) sublane pack so the
  # static row slices in the kernel never trigger relayout copies.
  assert th % 16 == 0 and hidden % 16 == 0, (
      "true_hidden_size and hidden_size must be multiples of 16")

  if q_tile is None:
    q_tile = seq if seq <= 256 else 256
  assert seq % q_tile == 0, "seq_len must be a multiple of the q tile"
  assert q_tile == seq or q_tile % 8 == 0
  n_qt = seq // q_tile

  # Pack parameters: one bf16 weight slab + one f32 bias/NoNorm slab.
  w_slab = jnp.concatenate(
      [params["q_w"], params["k_w"], params["v_w"], params["out_w"]],
      axis=0).astype(jnp.bfloat16)                     # [2*TH + H + A, A]
  b_slab = jnp.stack(
      [params["q_b"], params["k_b"], params["v_b"],
       params["out_b"], params["nonorm_w"], params["nonorm_b"]],
      axis=0).astype(jnp.float32)                      # [6, A]

  mask3 = attention_mask.reshape(bsz, 1, seq).astype(jnp.float32)

  kernel = functools.partial(
      mobilebert_attention_kernel,
      num_heads=num_heads, head_dim=head_dim, true_hidden=th, hidden=hidden)

  grid = (bsz, n_qt)   # batch (parallel / megacore) x q-row tiles (arbitrary)

  return pl.pallas_call(
      kernel,
      out_shape=jax.ShapeDtypeStruct((bsz, seq, th), jnp.float32),
      grid=grid,
      in_specs=[
          # activations: per-(batch, q-tile) blocks
          pl.BlockSpec((None, q_tile, th), lambda b, qt: (b, qt, 0)),   # query
          pl.BlockSpec((None, seq, th), lambda b, qt: (b, 0, 0)),       # key
          pl.BlockSpec((None, seq, hidden), lambda b, qt: (b, 0, 0)),   # value
          pl.BlockSpec((None, q_tile, th), lambda b, qt: (b, qt, 0)),   # layer_input
          pl.BlockSpec((None, 1, seq), lambda b, qt: (b, 0, 0)),        # mask
          # parameters: constant index maps -> DMA'd once, VMEM resident
          pl.BlockSpec(w_slab.shape, lambda b, qt: (0, 0)),
          pl.BlockSpec(b_slab.shape, lambda b, qt: (0, 0)),
      ],
      out_specs=pl.BlockSpec((None, q_tile, th), lambda b, qt: (b, qt, 0)),
      scratch_shapes=[
          pltpu.VMEM((q_tile, a), jnp.bfloat16),   # scaled q projection
          pltpu.VMEM((seq, a), jnp.bfloat16),      # k projection (per batch)
          pltpu.VMEM((seq, a), jnp.bfloat16),      # v projection (per batch)
          pltpu.VMEM((q_tile, a), jnp.bfloat16),   # per-head context assembly
      ],
      compiler_params=pltpu.CompilerParams(
          dimension_semantics=("parallel", "arbitrary"),
          vmem_limit_bytes=32 * 1024 * 1024),
  )(query_tensor, key_tensor, value_tensor, layer_input, mask3,
    w_slab, b_slab)


# --------------------------- pure-JAX reference ------------------------------

def ref_mobilebert_attention(qt, kt, vt, layer_input, mask, p,
                             num_heads, head_dim):
  q = qt @ p["q_w"] + p["q_b"]
  k = kt @ p["k_w"] + p["k_b"]
  v = vt @ p["v_w"] + p["v_b"]
  bsz, seq, a = q.shape

  def split(x):
    return x.reshape(bsz, seq, num_heads, head_dim).transpose(0, 2, 1, 3)

  qh, kh, vh = split(q), split(k), split(v)
  scores = jnp.einsum("bhqd,bhkd->bhqk", qh, kh) / math.sqrt(head_dim)
  scores = scores + mask[:, None, None, :]
  probs = jax.nn.softmax(scores, axis=-1)
  ctx = jnp.einsum("bhqk,bhkd->bhqd", probs, vh)
  ctx = ctx.transpose(0, 2, 1, 3).reshape(bsz, seq, a)
  out = ctx @ p["out_w"] + p["out_b"]
  out = (out + layer_input) * p["nonorm_w"] + p["nonorm_b"]
  return out


# ---------------------------------- main -------------------------------------

if __name__ == "__main__":
  # Small MobileBERT-ish config.
  B, S = 2, 8
  H = 32          # hidden_size           (value_tensor feature dim)
  TH = 16         # true_hidden_size      (q/k/layer_input feature dim)
  NH = 2          # num_attention_heads
  HD = TH // NH   # attention_head_size
  A = NH * HD     # all_head_size == TH

  key = jax.random.PRNGKey(0)
  keys = jax.random.split(key, 14)

  def w(k, shape, scale=0.05):
    return scale * jax.random.normal(k, shape, jnp.float32)

  # Linear weights stored pre-transposed as [in, out] so the kernel does x @ W.
  params = dict(
      q_w=w(keys[0], (TH, A)), q_b=w(keys[1], (A,)),
      k_w=w(keys[2], (TH, A)), k_b=w(keys[3], (A,)),
      v_w=w(keys[4], (H, A)),  v_b=w(keys[5], (A,)),
      out_w=w(keys[6], (A, TH)), out_b=w(keys[7], (TH,)),
      nonorm_w=1.0 + 0.01 * jax.random.normal(keys[8], (TH,), jnp.float32),
      nonorm_b=w(keys[9], (TH,)),
  )

  query_tensor = jax.random.normal(keys[10], (B, S, TH), jnp.float32)
  key_tensor = jax.random.normal(keys[11], (B, S, TH), jnp.float32)
  value_tensor = jax.random.normal(keys[12], (B, S, H), jnp.float32)
  layer_input = jax.random.normal(keys[13], (B, S, TH), jnp.float32)
  # Additive attention mask over key positions: 0 = attend, -1e9 = masked.
  attention_mask = jnp.zeros((B, S), jnp.float32).at[1, -1].set(-1e9)

  out = mobilebert_attention(query_tensor, key_tensor, value_tensor,
                             layer_input, attention_mask, params,
                             num_heads=NH)
  out = jax.block_until_ready(out)

  ref = ref_mobilebert_attention(query_tensor, key_tensor, value_tensor,
                                 layer_input, attention_mask, params, NH, HD)

  assert out.shape == (B, S, TH)
  max_err = float(jnp.max(jnp.abs(out - ref)))
  # bf16 matmuls + approx reciprocal => loosened tolerance vs pure-f32 ref.
  assert jnp.allclose(out, ref, atol=2e-2, rtol=2e-2), max_err
  print("KERNEL_OK")
</pallas_src>

<mosaic_0001>
module attributes {stable_mosaic.version = 11 : i64} {
  func.func @mobilebert_attention_kernel(%arg0: i32, %arg1: i32, %arg2: memref<1x8x16xf32, #tpu.memory_space<vmem>>, %arg3: memref<1x8x16xf32, #tpu.memory_space<vmem>>, %arg4: memref<1x8x32xf32, #tpu.memory_space<vmem>>, %arg5: memref<1x8x16xf32, #tpu.memory_space<vmem>>, %arg6: memref<1x1x8xf32, #tpu.memory_space<vmem>>, %arg7: memref<80x16xbf16, #tpu.memory_space<vmem>>, %arg8: memref<6x16xf32, #tpu.memory_space<vmem>>, %arg9: memref<1x8x16xf32, #tpu.memory_space<vmem>>, %arg10: memref<8x16xbf16, #tpu.memory_space<vmem>>, %arg11: memref<8x16xbf16, #tpu.memory_space<vmem>>, %arg12: memref<8x16xbf16, #tpu.memory_space<vmem>>, %arg13: memref<8x16xbf16, #tpu.memory_space<vmem>>) attributes {dimension_semantics = [#tpu.dimension_semantics<parallel>, #tpu.dimension_semantics<arbitrary>], iteration_bounds = array<i64: 2, 1>, scalar_prefetch = 0 : i64, scratch_operands = 4 : i64, tpu.core_type = #tpu.core_type<tc>, window_params = [{transform_indices = @transform_0, window_bounds = array<i64: 1, 8, 16>}, {transform_indices = @transform_1, window_bounds = array<i64: 1, 8, 16>}, {transform_indices = @transform_2, window_bounds = array<i64: 1, 8, 32>}, {transform_indices = @transform_3, window_bounds = array<i64: 1, 8, 16>}, {transform_indices = @transform_4, window_bounds = array<i64: 1, 1, 8>}, {pipeline_mode = #tpu.pipeline_mode<synchronous>, transform_indices = @transform_5, window_bounds = array<i64: 80, 16>}, {pipeline_mode = #tpu.pipeline_mode<synchronous>, transform_indices = @transform_6, window_bounds = array<i64: 6, 16>}, {transform_indices = @transform_7, window_bounds = array<i64: 1, 8, 16>}]} {
    %c0 = arith.constant 0 : index
    %c0_0 = arith.constant 0 : index
    %0 = vector.load %arg7[%c0, %c0_0] : memref<80x16xbf16, #tpu.memory_space<vmem>>, vector<16x16xbf16>
    %c16 = arith.constant 16 : index
    %c0_1 = arith.constant 0 : index
    %1 = vector.load %arg7[%c16, %c0_1] : memref<80x16xbf16, #tpu.memory_space<vmem>>, vector<16x16xbf16>
    %c32 = arith.constant 32 : index
    %c0_2 = arith.constant 0 : index
    %2 = vector.load %arg7[%c32, %c0_2] : memref<80x16xbf16, #tpu.memory_space<vmem>>, vector<32x16xbf16>
    %c64 = arith.constant 64 : index
    %c0_3 = arith.constant 0 : index
    %3 = vector.load %arg7[%c64, %c0_3] : memref<80x16xbf16, #tpu.memory_space<vmem>>, vector<16x16xbf16>
    %c0_4 = arith.constant 0 : index
    %c0_5 = arith.constant 0 : index
    %4 = vector.load %arg8[%c0_4, %c0_5] : memref<6x16xf32, #tpu.memory_space<vmem>>, vector<1x16xf32>
    %c1 = arith.constant 1 : index
    %c0_6 = arith.constant 0 : index
    %5 = vector.load %arg8[%c1, %c0_6] : memref<6x16xf32, #tpu.memory_space<vmem>>, vector<1x16xf32>
    %c2 = arith.constant 2 : index
    %c0_7 = arith.constant 0 : index
    %6 = vector.load %arg8[%c2, %c0_7] : memref<6x16xf32, #tpu.memory_space<vmem>>, vector<1x16xf32>
    %c3 = arith.constant 3 : index
    %c0_8 = arith.constant 0 : index
    %7 = vector.load %arg8[%c3, %c0_8] : memref<6x16xf32, #tpu.memory_space<vmem>>, vector<1x16xf32>
    %c4 = arith.constant 4 : index
    %c0_9 = arith.constant 0 : index
    %8 = vector.load %arg8[%c4, %c0_9] : memref<6x16xf32, #tpu.memory_space<vmem>>, vector<1x16xf32>
    %c5 = arith.constant 5 : index
    %c0_10 = arith.constant 0 : index
    %9 = vector.load %arg8[%c5, %c0_10] : memref<6x16xf32, #tpu.memory_space<vmem>>, vector<1x16xf32>
    %c0_i32 = arith.constant 0 : i32
    %10 = arith.cmpi eq, %arg1, %c0_i32 : i32
    %11 = arith.extui %10 : i1 to i32
    %c0_i32_11 = arith.constant 0 : i32
    %12 = arith.cmpi ne, %11, %c0_i32_11 : i32
    scf.if %12 {
      %c0_53 = arith.constant 0 : index
      %c0_54 = arith.constant 0 : index
      %c0_55 = arith.constant 0 : index
      %79 = vector.load %arg3[%c0_53, %c0_54, %c0_55] : memref<1x8x16xf32, #tpu.memory_space<vmem>>, vector<1x8x16xf32>
      %80 = vector.shape_cast %79 : vector<1x8x16xf32> to vector<8x16xf32>
      %81 = arith.truncf %80 : vector<8x16xf32> to vector<8x16xbf16>
      %c0_56 = arith.constant 0 : index
      %c0_57 = arith.constant 0 : index
      %c0_58 = arith.constant 0 : index
      %82 = vector.load %arg4[%c0_56, %c0_57, %c0_58] : memref<1x8x32xf32, #tpu.memory_space<vmem>>, vector<1x8x32xf32>
      %83 = vector.shape_cast %82 : vector<1x8x32xf32> to vector<8x32xf32>
      %84 = arith.truncf %83 : vector<8x32xf32> to vector<8x32xbf16>
      %cst_59 = arith.constant dense<0.000000e+00> : vector<8x16xf32>
      %85 = tpu.matmul %81, %1, %cst_59 {dimension_numbers = #tpu.dot_dimension_numbers<[1], [0], [0], [1], [0, 0, 1, 1], [], []>} : vector<8x16xbf16>, vector<16x16xbf16>, vector<8x16xf32> -> vector<8x16xf32>
      %86 = vector.broadcast %5 : vector<1x16xf32> to vector<8x16xf32>
      %87 = arith.addf %85, %86 : vector<8x16xf32>
      %88 = arith.truncf %87 : vector<8x16xf32> to vector<8x16xbf16>
      %c0_60 = arith.constant 0 : index
      %c0_61 = arith.constant 0 : index
      %89 = vector.load %arg11[%c0_60, %c0_61] : memref<8x16xbf16, #tpu.memory_space<vmem>>, vector<8x16xbf16>
      tpu.vector_store %arg11[%c0_60, %c0_61], %88 {strides = array<i32>} : memref<8x16xbf16, #tpu.memory_space<vmem>>, vector<8x16xbf16>,
      %cst_62 = arith.constant dense<0.000000e+00> : vector<8x16xf32>
      %90 = tpu.matmul %84, %2, %cst_62 {dimension_numbers = #tpu.dot_dimension_numbers<[1], [0], [0], [1], [0, 0, 1, 1], [], []>} : vector<8x32xbf16>, vector<32x16xbf16>, vector<8x16xf32> -> vector<8x16xf32>
      %91 = vector.broadcast %6 : vector<1x16xf32> to vector<8x16xf32>
      %92 = arith.addf %90, %91 : vector<8x16xf32>
      %93 = arith.truncf %92 : vector<8x16xf32> to vector<8x16xbf16>
      %c0_63 = arith.constant 0 : index
      %c0_64 = arith.constant 0 : index
      %94 = vector.load %arg12[%c0_63, %c0_64] : memref<8x16xbf16, #tpu.memory_space<vmem>>, vector<8x16xbf16>
      tpu.vector_store %arg12[%c0_63, %c0_64], %93 {strides = array<i32>} : memref<8x16xbf16, #tpu.memory_space<vmem>>, vector<8x16xbf16>,
    } else {
    }
    %c0_12 = arith.constant 0 : index
    %c0_13 = arith.constant 0 : index
    %c0_14 = arith.constant 0 : index
    %13 = vector.load %arg2[%c0_12, %c0_13, %c0_14] : memref<1x8x16xf32, #tpu.memory_space<vmem>>, vector<1x8x16xf32>
    %14 = vector.shape_cast %13 : vector<1x8x16xf32> to vector<8x16xf32>
    %15 = arith.truncf %14 : vector<8x16xf32> to vector<8x16xbf16>
    %cst = arith.constant dense<0.000000e+00> : vector<8x16xf32>
    %16 = tpu.matmul %15, %0, %cst {dimension_numbers = #tpu.dot_dimension_numbers<[1], [0], [0], [1], [0, 0, 1, 1], [], []>} : vector<8x16xbf16>, vector<16x16xbf16>, vector<8x16xf32> -> vector<8x16xf32>
    %17 = vector.broadcast %4 : vector<1x16xf32> to vector<8x16xf32>
    %18 = arith.addf %16, %17 : vector<8x16xf32>
    %cst_15 = arith.constant 0.353553385 : f32
    %19 = vector.broadcast %cst_15 : f32 to vector<8x16xf32>
    %20 = arith.mulf %18, %19 : vector<8x16xf32>
    %21 = arith.truncf %20 : vector<8x16xf32> to vector<8x16xbf16>
    %c0_16 = arith.constant 0 : index
    %c0_17 = arith.constant 0 : index
    %22 = vector.load %arg10[%c0_16, %c0_17] : memref<8x16xbf16, #tpu.memory_space<vmem>>, vector<8x16xbf16>
    tpu.vector_store %arg10[%c0_16, %c0_17], %21 {strides = array<i32>} : memref<8x16xbf16, #tpu.memory_space<vmem>>, vector<8x16xbf16>,
    %c0_18 = arith.constant 0 : index
    %c0_19 = arith.constant 0 : index
    %c0_20 = arith.constant 0 : index
    %23 = vector.load %arg6[%c0_18, %c0_19, %c0_20] : memref<1x1x8xf32, #tpu.memory_space<vmem>>, vector<1x1x8xf32>
    %24 = vector.shape_cast %23 : vector<1x1x8xf32> to vector<1x8xf32>
    %c0_21 = arith.constant 0 : index
    %c0_22 = arith.constant 0 : index
    %25 = vector.load %arg10[%c0_21, %c0_22] : memref<8x16xbf16, #tpu.memory_space<vmem>>, vector<8x8xbf16>
    %c0_23 = arith.constant 0 : index
    %c0_24 = arith.constant 0 : index
    %26 = vector.load %arg11[%c0_23, %c0_24] : memref<8x16xbf16, #tpu.memory_space<vmem>>, vector<8x8xbf16>
    %c0_25 = arith.constant 0 : index
    %c0_26 = arith.constant 0 : index
    %27 = vector.load %arg12[%c0_25, %c0_26] : memref<8x16xbf16, #tpu.memory_space<vmem>>, vector<8x8xbf16>
    %cst_27 = arith.constant dense<0.000000e+00> : vector<8x8xf32>
    %28 = tpu.matmul %25, %26, %cst_27 {dimension_numbers = #tpu.dot_dimension_numbers<[1], [1], [0], [0], [0, 0, 1, 0], [], []>} : vector<8x8xbf16>, vector<8x8xbf16>, vector<8x8xf32> -> vector<8x8xf32>
    %29 = vector.broadcast %24 : vector<1x8xf32> to vector<8x8xf32>
    %30 = arith.addf %28, %29 : vector<8x8xf32>
    %cst_28 = arith.constant dense<0xFF800000> : vector<8xf32>
    %31 = vector.multi_reduction <maximumf>, %30, %cst_28 [1] : vector<8x8xf32> to vector<8xf32>
    %32 = vector.shape_cast %31 : vector<8xf32> to vector<8x1xf32>
    %33 = vector.broadcast %32 : vector<8x1xf32> to vector<8x8xf32>
    %34 = arith.subf %30, %33 : vector<8x8xf32>
    %35 = math.exp %34 : vector<8x8xf32>
    %cst_29 = arith.constant dense<0.000000e+00> : vector<8xf32>
    %36 = vector.multi_reduction <add>, %35, %cst_29 [1] : vector<8x8xf32> to vector<8xf32>
    %37 = vector.shape_cast %36 : vector<8xf32> to vector<8x1xf32>
    %38 = tpu.reciprocal %37 {approx = true} : vector<8x1xf32> -> vector<8x1xf32>
    %39 = vector.broadcast %38 : vector<8x1xf32> to vector<8x8xf32>
    %40 = arith.mulf %35, %39 : vector<8x8xf32>
    %41 = arith.truncf %40 : vector<8x8xf32> to vector<8x8xbf16>
    %cst_30 = arith.constant dense<0.000000e+00> : vector<8x8xf32>
    %42 = tpu.matmul %41, %27, %cst_30 {dimension_numbers = #tpu.dot_dimension_numbers<[1], [0], [0], [1], [0, 0, 1, 1], [], []>} : vector<8x8xbf16>, vector<8x8xbf16>, vector<8x8xf32> -> vector<8x8xf32>
    %43 = arith.truncf %42 : vector<8x8xf32> to vector<8x8xbf16>
    %c0_31 = arith.constant 0 : index
    %c0_32 = arith.constant 0 : index
    %44 = vector.load %arg13[%c0_31, %c0_32] : memref<8x16xbf16, #tpu.memory_space<vmem>>, vector<8x8xbf16>
    tpu.vector_store %arg13[%c0_31, %c0_32], %43 {strides = array<i32>} : memref<8x16xbf16, #tpu.memory_space<vmem>>, vector<8x8xbf16>,
    %c0_33 = arith.constant 0 : index
    %c8 = arith.constant 8 : index
    %45 = vector.load %arg10[%c0_33, %c8] : memref<8x16xbf16, #tpu.memory_space<vmem>>, vector<8x8xbf16>
    %c0_34 = arith.constant 0 : index
    %c8_35 = arith.constant 8 : index
    %46 = vector.load %arg11[%c0_34, %c8_35] : memref<8x16xbf16, #tpu.memory_space<vmem>>, vector<8x8xbf16>
    %c0_36 = arith.constant 0 : index
    %c8_37 = arith.constant 8 : index
    %47 = vector.load %arg12[%c0_36, %c8_37] : memref<8x16xbf16, #tpu.memory_space<vmem>>, vector<8x8xbf16>
    %cst_38 = arith.constant dense<0.000000e+00> : vector<8x8xf32>
    %48 = tpu.matmul %45, %46, %cst_38 {dimension_numbers = #tpu.dot_dimension_numbers<[1], [1], [0], [0], [0, 0, 1, 0], [], []>} : vector<8x8xbf16>, vector<8x8xbf16>, vector<8x8xf32> -> vector<8x8xf32>
    %49 = vector.broadcast %24 : vector<1x8xf32> to vector<8x8xf32>
    %50 = arith.addf %48, %49 : vector<8x8xf32>
    %cst_39 = arith.constant dense<0xFF800000> : vector<8xf32>
    %51 = vector.multi_reduction <maximumf>, %50, %cst_39 [1] : vector<8x8xf32> to vector<8xf32>
    %52 = vector.shape_cast %51 : vector<8xf32> to vector<8x1xf32>
    %53 = vector.broadcast %52 : vector<8x1xf32> to vector<8x8xf32>
    %54 = arith.subf %50, %53 : vector<8x8xf32>
    %55 = math.exp %54 : vector<8x8xf32>
    %cst_40 = arith.constant dense<0.000000e+00> : vector<8xf32>
    %56 = vector.multi_reduction <add>, %55, %cst_40 [1] : vector<8x8xf32> to vector<8xf32>
    %57 = vector.shape_cast %56 : vector<8xf32> to vector<8x1xf32>
    %58 = tpu.reciprocal %57 {approx = true} : vector<8x1xf32> -> vector<8x1xf32>
    %59 = vector.broadcast %58 : vector<8x1xf32> to vector<8x8xf32>
    %60 = arith.mulf %55, %59 : vector<8x8xf32>
    %61 = arith.truncf %60 : vector<8x8xf32> to vector<8x8xbf16>
    %cst_41 = arith.constant dense<0.000000e+00> : vector<8x8xf32>
    %62 = tpu.matmul %61, %47, %cst_41 {dimension_numbers = #tpu.dot_dimension_numbers<[1], [0], [0], [1], [0, 0, 1, 1], [], []>} : vector<8x8xbf16>, vector<8x8xbf16>, vector<8x8xf32> -> vector<8x8xf32>
    %63 = arith.truncf %62 : vector<8x8xf32> to vector<8x8xbf16>
    %c0_42 = arith.constant 0 : index
    %c8_43 = arith.constant 8 : index
    %64 = vector.load %arg13[%c0_42, %c8_43] : memref<8x16xbf16, #tpu.memory_space<vmem>>, vector<8x8xbf16>
    tpu.vector_store %arg13[%c0_42, %c8_43], %63 {strides = array<i32>} : memref<8x16xbf16, #tpu.memory_space<vmem>>, vector<8x8xbf16>,
    %c0_44 = arith.constant 0 : index
    %c0_45 = arith.constant 0 : index
    %65 = vector.load %arg13[%c0_44, %c0_45] : memref<8x16xbf16, #tpu.memory_space<vmem>>, vector<8x16xbf16>
    %cst_46 = arith.constant dense<0.000000e+00> : vector<8x16xf32>
    %66 = tpu.matmul %65, %3, %cst_46 {dimension_numbers = #tpu.dot_dimension_numbers<[1], [0], [0], [1], [0, 0, 1, 1], [], []>} : vector<8x16xbf16>, vector<16x16xbf16>, vector<8x16xf32> -> vector<8x16xf32>
    %67 = vector.broadcast %7 : vector<1x16xf32> to vector<8x16xf32>
    %68 = arith.addf %66, %67 : vector<8x16xf32>
    %c0_47 = arith.constant 0 : index
    %c0_48 = arith.constant 0 : index
    %c0_49 = arith.constant 0 : index
    %69 = vector.load %arg5[%c0_47, %c0_48, %c0_49] : memref<1x8x16xf32, #tpu.memory_space<vmem>>, vector<1x8x16xf32>
    %70 = vector.shape_cast %69 : vector<1x8x16xf32> to vector<8x16xf32>
    %71 = arith.addf %68, %70 : vector<8x16xf32>
    %72 = vector.broadcast %8 : vector<1x16xf32> to vector<8x16xf32>
    %73 = arith.mulf %71, %72 : vector<8x16xf32>
    %74 = vector.broadcast %9 : vector<1x16xf32> to vector<8x16xf32>
    %75 = arith.addf %73, %74 : vector<8x16xf32>
    %c0_50 = arith.constant 0 : index
    %c0_51 = arith.constant 0 : index
    %c0_52 = arith.constant 0 : index
    %76 = vector.load %arg9[%c0_50, %c0_51, %c0_52] : memref<1x8x16xf32, #tpu.memory_space<vmem>>, vector<1x8x16xf32>
    %77 = vector.shape_cast %76 : vector<1x8x16xf32> to vector<8x16xf32>
    %78 = vector.shape_cast %75 : vector<8x16xf32> to vector<1x8x16xf32>
    tpu.vector_store %arg9[%c0_50, %c0_51, %c0_52], %78 {strides = array<i32>} : memref<1x8x16xf32, #tpu.memory_space<vmem>>, vector<1x8x16xf32>,
    return
  }
  func.func @transform_0(%arg0: i32, %arg1: i32) -> (i32, i32, i32) {
    %c0_i32 = arith.constant 0 : i32
    %c0_i32_0 = arith.constant 0 : i32
    return %arg0, %arg1, %c0_i32 : i32, i32, i32
  }
  func.func @transform_1(%arg0: i32, %arg1: i32) -> (i32, i32, i32) {
    %c0_i32 = arith.constant 0 : i32
    %c0_i32_0 = arith.constant 0 : i32
    %c0_i32_1 = arith.constant 0 : i32
    return %arg0, %c0_i32, %c0_i32_0 : i32, i32, i32
  }
  func.func @transform_2(%arg0: i32, %arg1: i32) -> (i32, i32, i32) {
    %c0_i32 = arith.constant 0 : i32
    %c0_i32_0 = arith.constant 0 : i32
    %c0_i32_1 = arith.constant 0 : i32
    return %arg0, %c0_i32, %c0_i32_0 : i32, i32, i32
  }
  func.func @transform_3(%arg0: i32, %arg1: i32) -> (i32, i32, i32) {
    %c0_i32 = arith.constant 0 : i32
    %c0_i32_0 = arith.constant 0 : i32
    return %arg0, %arg1, %c0_i32 : i32, i32, i32
  }
  func.func @transform_4(%arg0: i32, %arg1: i32) -> (i32, i32, i32) {
    %c0_i32 = arith.constant 0 : i32
    %c0_i32_0 = arith.constant 0 : i32
    %c0_i32_1 = arith.constant 0 : i32
    return %arg0, %c0_i32, %c0_i32_0 : i32, i32, i32
  }
  func.func @transform_5(%arg0: i32, %arg1: i32) -> (i32, i32) {
    %c0_i32 = arith.constant 0 : i32
    %c0_i32_0 = arith.constant 0 : i32
    %c0_i32_1 = arith.constant 0 : i32
    return %c0_i32, %c0_i32_0 : i32, i32
  }
  func.func @transform_6(%arg0: i32, %arg1: i32) -> (i32, i32) {
    %c0_i32 = arith.constant 0 : i32
    %c0_i32_0 = arith.constant 0 : i32
    %c0_i32_1 = arith.constant 0 : i32
    return %c0_i32, %c0_i32_0 : i32, i32
  }
  func.func @transform_7(%arg0: i32, %arg1: i32) -> (i32, i32, i32) {
    %c0_i32 = arith.constant 0 : i32
    %c0_i32_0 = arith.constant 0 : i32
    return %arg0, %arg1, %c0_i32 : i32, i32, i32
  }
}

</mosaic_0001>

<bundles_post_ra>
// kernel: tpu_custom_call.1
= control target key start
LH: loop header
LB: loop body
LE: loop exit
PB: predicated region body
PF: predicated region fallthrough
CT: control target
= control target key end

     0   :  { %s1815_s0 = inlined_call_operand.vmem [shape: f32[2,8,16], index: 0, kind: input, shape index: {}]   ;;  %s1816_s1 = inlined_call_operand.vmem [shape: f32[2,8,16], index: 1, kind: input, shape index: {}]   ;;  %s1817_s2 = inlined_call_operand.vmem [shape: f32[2,8,32], index: 2, kind: input, shape index: {}]   ;;  %s1818_s3 = inlined_call_operand.hbm [shape: f32[2,8,16], index: 3, kind: input, shape index: {}]   ;;  %s1819_s4 = inlined_call_operand.hbm [shape: f32[2,1,8], index: 4, kind: input, shape index: {}]   ;;  %s1820_s5 = inlined_call_operand.vmem [shape: bf16[80,16], index: 5, kind: input, shape index: {}]   ;;  %s1821_s6 = inlined_call_operand.hbm [shape: f32[6,16], index: 6, kind: input, shape index: {}]   ;;  %s1822_s7 = inlined_call_operand.hbm [shape: f32[2,8,16], index: 7, kind: output, shape index: {}]  }
   0x1   :  { %1831 = sst [smem:[#allocation21_spill]] %s1818_s3 }
   0x2   :  { %1832 = sst [smem:[#allocation22_spill]] %s1821_s6 }
   0x3   :  { %1833 = sst [smem:[#allocation23_spill]] %s1822_s7 }
   0x4   :  { %12 = vsyncpa [#allocation7], 0 }
   0x5   :  { %14 = vsyncpa [#allocation7 + $0x1], 0 }
   0x6   :  { %15 = vsyncpa [#allocation10], 0 }
   0x7   :  { %17 = vsyncpa [#allocation10 + $0x1], 0 }
   0x8   :  { %18 = vsyncpa [#allocation8], 0 }
   0x9   :  { %20 = vsyncpa [#allocation8 + $0x1], 0  ;;  %s1532_s24 = smov 0   ;;  %s1534_s25 = smov 0  }
   0xa   :  { %s1536_s26 = smov 0   ;;  %s1538_s27 = smov 0  }
   0xb   :  { %s1540_s28 = smov 0   ;;  %s1542_s29 = smov 0  }
   0xc LB: > { %1834 = sst [smem:[#allocation17_spill]] %s1462_s24  ;;  %s1563_s30 = sadd.s32 4294967295, %s1482_s29   ;;  %s1482_s29 = sphi %s1542_s29, %s26_s29   ;;  %s1478_s28 = sphi %s1540_s28, %s1865_s28   ;;  %s1474_s27 = sphi %s1538_s27, %s1864_s27   ;;  %s1470_s26 = sphi %s1536_s26, %s1863_s26   ;;  %s1466_s25 = sphi %s1534_s25, %s1862_s25   ;;  %s1462_s24 = sphi %s1532_s24, %s1861_s24  }
   0xd   : > { %s1104_s8 = sadd.s32 4294967294, %s1482_s29   ;;  %p134_p0 = scmp.ne.s32.totalorder %s1470_s26, %s1466_s25 }
   0xe   : > { %p140_p1 = scmp.ne.s32.totalorder %s1466_s25, %s1462_s24  ;;  %p1823_p2 = scmp.eq.s32.totalorder %s1563_s30, 0 }
   0xf   : > { %p234_p3 = scmp.eq.s32.totalorder %s1563_s30, 1  ;;  %p240_p4 = scmp.eq.s32.totalorder %s1104_s8, 1 }
  0x10   : > { %p1575_p5 = por %p1823_p2, %p140_p1  ;;  %p1105_p6 = scmp.ge.s32.totalorder %s1482_s29, 1 }
  0x11   : > { %p1583_p7 = por %p234_p3, %p134_p0  ;;  %p1587_p8 = por %p240_p4, %p140_p1 }
  0x12   : > { %s1835_s10 = scalar_select %p1575_p5, 1, 0 }
  0x13   : > { %s1836_s11 = scalar_select %p1583_p7, 1, 0 }
  0x14   : > { %s1837_s12 = scalar_select %p1587_p8, 1, 0 }
  0x15   : > { %p247_p9 = scmp.lt.s32.totalorder %s1482_s29, 3  ;;  %s1484_s14 = smov [#allocation11]  }
  0x16   : > { %1838 = sst [smem:[#allocation18_spill]] %s1837_s12  ;;  %s263_s15 = sshll.u32 %s1484_s14, 4  ;;  %s264_s15 = int_to_ptr.vmem [resolvable:$true] %s263_s15 }
  0x17   : > { %p1593_p11 = pnand %p1105_p6, %p247_p9  ;;  %s38_s16 = sadd.s32 1, %s1478_s28 }
  0x18   : > { %p135_p13 = scmp.eq.s32.totalorder %s1482_s29, 0  ;;  %p1607_p1 = scmp.ge.s32.totalorder %s38_s16, 2 }
  0x19   : > { %s1839_s13 = scalar_select %p1593_p11, 1, 0 }
  0x1a   : > { %p1224_p12 = pneg %p1593_p11  ;;  %p1614_p4 = por %p135_p13, %p134_p0 }
  0x1b   : > { %p1240_p6 = scmp.lt.s32.totalorder %s1482_s29, 2  ;;  %s1620_s20 = sand.u32 1, %s1470_s26  }
  0x1c   : > { %p1603_p3 = pnand %p1224_p12, %p1823_p2  ;;  %s1323_s21 = scalar_lea.vmem %s264_s15, 128 }
  0x1d   : > { %p1324_p12 = scmp.ne.s32.totalorder %s264_s15, %s1323_s21  ;;  %p1331_p8 = scmp.lt.s32.totalorder %s264_s15, %s264_s15 }
  0x1e   : > { %p1314_p9 = pneg %p1603_p3  ;;  %p1332_p7 = scmp.lt.s32.totalorder %s1323_s21, %s1323_s21 }
  0x20   : > { %p1326_p10 = pnand %p1324_p12, %p1314_p9  ;;  %p1333_p5 = por %p1332_p7, %p1331_p8 }
  0x22   : > { %p1327_p2 = pneg %p1326_p10 }
  0x24   : > { %p1334_p11 = pnand %p1333_p5, %p1327_p2 }
  0x26   : > { %1337 = shalt.err (!%p1334_p11)
}
  0x27   : > { %s1843_s6 = sld [smem:[#allocation22_spill]]  ;;  %s1867_s16 = smov (%p1607_p1, %s38_s16), 0 }
  0x28   : > { %1844 = sst [smem:[#allocation19_spill]] %s1867_s16  ;;  %s1108_s8 = sshll.u32 %s1620_s20, 3 }
  0x29   : > { %s122_s14 = ssub.s32 %s1478_s28, %s1867_s16  ;;  %s1109_s17 = sshll.u32 %s1478_s28, 7 }
  0x2a   : > { %p125_p0 = scmp.eq.s32.totalorder %s122_s14, 0  ;;  %s1845_s3 = sld [smem:[#allocation21_spill]] }
  0x2b   : > { %s302_s9 = scalar_lea.vmem [#allocation6], %s1108_s8  ;;  %s1846_s24 = sadd.s32 1, %s1470_s26 }
  0x2c   : > { %s310_s12 = sshll.u32 %s302_s9, 4  ;;  %p1649_p2 = pnand %p1240_p6, %p1614_p4  ;;  %s311_s12 = int_to_ptr.vmem [resolvable:$true] %s310_s12 }
  0x2d   : > { %1227 = dma.hbm_to_vmem [thread:$0]  (!%p1603_p3), %s1843_s6, 128, %s264_s15, [#allocation10]  }
  0x2e   : > { %s1643_s7 = scalar_select %p125_p0, %s1470_s26, %s1846_s24  }
  0x2f   : > { %s317_s18 = sand.u32 1, %s1482_s29   ;;  %s299_s14 = scalar_lea.sflag [#allocation7], %s1620_s20 }
  0x30   : > { %s308_s23 = scalar_lea.hbm %s1845_s3, %s1109_s17  ;;  %1847 = sst [smem:[#allocation20_spill]] %s1643_s7 }
  0x31   : > { %p1340_p5 = pneg %p1649_p2  ;;  %s1351_s21 = scalar_lea.vmem %s311_s12, 128 }
  0x32   : > { %p1352_p7 = scmp.ne.s32.totalorder %s311_s12, %s1351_s21  ;;  %s1485_s24 = smov [#allocation6]  }
  0x33   : > { %s1356_s9 = sshll.u32 %s1485_s24, 4  ;;  %s1357_s9 = int_to_ptr.vmem [resolvable:$false] %s1356_s9 }
  0x34   : > { %p1354_p8 = pnand %p1352_p7, %p1340_p5  ;;  %s1358_s19 = scalar_lea.vmem %s1357_s9, 256 }
  0x35   : > { %p1359_p11 = scmp.lt.s32.totalorder %s311_s12, %s1357_s9  ;;  %p1360_p13 = scmp.lt.s32.totalorder %s1358_s19, %s1351_s21 }
  0x36   : > { %p1355_p10 = pneg %p1354_p8 }
  0x37   : > { %p1361_p3 = por %p1360_p13, %p1359_p11 }
  0x39   : > { %p1362_p1 = pnand %p1361_p3, %p1355_p10 }
  0x3b   : > { %1365 = shalt.err (!%p1362_p1)
}
  0x3c   : > { %1231 = dma.hbm_to_vmem [thread:$0]  (!%p1649_p2), %s308_s23, 128, %s311_s12, %s299_s14  }
  0x3d   : > { %s1110_s8 = sshll.u32 %s1478_s28, 4  ;;  %s320_s17 = scalar_lea.vmem [#allocation9], %s1620_s20 }
  0x3e   : > { %s327_s22 = sshll.u32 %s320_s17, 4  ;;  %s325_s24 = scalar_lea.hbm %s1819_s4, %s1110_s8  ;;  %s328_s22 = int_to_ptr.vmem [resolvable:$true] %s327_s22 }
  0x3f   : > { %s318_s16 = scalar_lea.sflag [#allocation10], %s317_s18  ;;  %s1379_s9 = scalar_lea.vmem %s328_s22, 16 }
  0x40   : > { %p1380_p4 = scmp.ne.s32.totalorder %s328_s22, %s1379_s9  ;;  %s1486_s21 = smov [#allocation9]  }
  0x41   : > { %s1384_s19 = sshll.u32 %s1486_s21, 4  ;;  %s1385_s19 = int_to_ptr.vmem [resolvable:$false] %s1384_s19 }
  0x42   : > { %p1382_p6 = pnand %p1380_p4, %p1340_p5  ;;  %s1386_s7 = scalar_lea.vmem %s1385_s19, 32 }
  0x43   : > { %p1387_p12 = scmp.lt.s32.totalorder %s328_s22, %s1385_s19  ;;  %p1388_p0 = scmp.lt.s32.totalorder %s1386_s7, %s1379_s9 }
  0x44   : > { %p1383_p9 = pneg %p1382_p6 }
  0x45   : > { %p1389_p7 = por %p1388_p0, %p1387_p12 }
  0x47   : > { %p1390_p8 = pnand %p1389_p7, %p1383_p9 }
  0x49   : > { %1393 = shalt.err (!%p1390_p8)
}
  0x4a   : > { %1234 = dma.hbm_to_vmem [thread:$0]  (!%p1649_p2), %s325_s24, 16, %s328_s22, %s318_s16  }
  0x4b   : > { %p1849_p10 = scmp.ne.s32.totalorder %s1839_s13, 0 }
  0x4c   : > { %s1675_s3 = sand.u32 (!%p1849_p10), 1, %s1466_s25   ;;  %p1850_p5 = scmp.ne.s32.totalorder (!%p1849_p10), %s1835_s10, 0 }
  0x4d   : > { %336 = sbr.rel (%p1849_p10) target bundleno = 1470 (0x5be), region = 48  ;;  %s1112_s6 = sshll.u32 (!%p1849_p10), %s1675_s3, 3 }
  0x4e   : > { %s339_s12 = scalar_lea.sflag (!%p1849_p10), [#allocation7], %s1675_s3  ;;  %s1681_s7 = scalar_lea.vmem (!%p1849_p10), [#allocation6], %s1112_s6 }
  0x52   : > { %1445 = dma.done.wait (%p1850_p5), %s339_s12, 128  }
  0x53   : > { %1447 = vsyncadd (%p1850_p5), %s339_s12, 4294967168  ;;  %s347_s13 = sand.u32 1, %s1563_s30   ;;  %s350_s20 = scalar_lea.vmem [#allocation9], %s1675_s3 }
  0x54   : > { %s348_s16 = scalar_lea.sflag [#allocation10], %s347_s13 }
  0x55   : > { %1449 = dma.done.wait (%p1850_p5), %s348_s16, 16  }
  0x56   : > { %1451 = vsyncadd (%p1850_p5), %s348_s16, 4294967280  ;;  %p1851_p2 = scmp.eq.s32.totalorder %s1563_s30, 0 }
  0x58   : > { %1453 = dma.done.wait (%p1851_p2), [#allocation10], 128   ;;  %p1852_p11 = pmov %p1851_p2 }
  0x59   : > { %p404_p13 = scmp.lt.s32.totalorder %s1474_s27, 1  ;;  %v1487_v0 = vmov 0.0   ;;  %vm1488_vm0 = vmmov 0   ;;  %v1296_v1 = vld [vmem:[%s1820_s5 + $0x8] sm:$0xff]   ;;  %vm454_vm1 = vcmask 130048   ;;  %v1297_v4 = vld [vmem:[%s1820_s5] sm:$0xff]  }
  0x5a   : > { %1455 = vsyncadd (%p1852_p11), [#allocation10], 4294967168  ;;  %1164 = vmatprep.subr.bf16.mxu0 %v1487_v0  ;;  %1166 = vmatprep.mubr.msk.bf16.mxu0 %vm1488_vm0, %v1487_v0  ;;  %v1298_v7 = vld [vmem:[%s1820_s5 + $0x18] sm:$0xff]   ;;  %v1299_v8 = vld [vmem:[%s1820_s5 + $0x10] sm:$0xff]   ;;  %vm517_vm2 = vcmask 261120   ;;  %vm499_vm3 = vcmask 125952  }
  0x5b   : > { %s405_s23 = scalar_select %p404_p13, %s1474_s27, 1  ;;  %1170 = vmatprep.subr.bf16.mxu1 %v1487_v0  ;;  %1174 = vmatprep.mubr.msk.bf16.mxu1 %vm1488_vm0, %v1487_v0  ;;  %v1118_v11 = vld [vmem:[#allocation11 + $0x1] ss:$0 sm:$0xff]  ;;  %v1125_v18 = vld [vmem:[#allocation11] ss:$0 sm:$0xff]  ;;  %vm633_vm4 = vcmask 64512  }
  0x5c   : > { %1165 = vmatpush3.bf16.msra.mxu0 %v1296_v1  ;;  %1171 = vmatpush3.bf16.msra.mxu1 %v1298_v7  ;;  %v1121_v31 = vld [vmem:[#allocation11 + $0x2] ss:$0 sm:$0xff]  ;;  %vm695_vm5 = vcmask 1043456   ;;  %v1128_v43 = vld [vmem:[%s350_s20] ss:$0 sm:$0xff]  ;;  %vm740_vm6 = vcmask 60416  }
  0x5d   : > { %s1115_s10 = sshll.u32 %s405_s23, 3  ;;  %1178 = vmatprep.subr.bf16.mxu0 %v1487_v0  ;;  %1172 = vmatprep.subr.bf16.mxu1 %v1487_v0  ;;  %s1490_s14 = smov 8   ;;  %vm871_vm7 = vcmask 126016  }
  0x5e   : > { %s414_s18 = scalar_lea.vmem %s1816_s1, %s1115_s10  ;;  %s410_s21 = scalar_lea.vmem %s1815_s0, %s1115_s10 }
  0x5f   : > { %v440_v2 = vld [vmem:[%s414_s18] sm:$0xff]  ;;  %s418_s30 = scalar_lea.vmem %s1817_s2, %s1115_s10  ;;  %s1489_s10 = smov 120  }
  0x60   : > { %v441_v3 = vpack.c.bf16 %v440_v2, %v440_v2  ;;  %v563_v5 = vld [vmem:[%s410_s21] sm:$0xff]  ;;  %1173 = vmatpush3.bf16.msra.mxu1 %v1299_v8  ;;  %s1143_s8 = sshll.u32 %s1474_s27, 7  ;;  %s403_s17 = scalar_lea.vmem [#allocation12], %s1112_s6 }
  0x61   : > { %v564_v6 = vpack.c.bf16 %v563_v5, %v563_v5  ;;  %1184 = vmatprep.subr.bf16.mxu1 %v1487_v0  ;;  %v442_v9 = vld [vmem:[%s418_s30] sm:$0xff]  ;;  %s955_s22 = sshll.u32 %s403_s17, 4  ;;  %s1853_s21 = sld [smem:[#allocation23_spill]]  ;;  %s956_s22 = int_to_ptr.vmem [resolvable:$true] %s955_s22 }
  0x62   : > { %1167 = vmatmul.mubr.msk.bf16.vlgmr.msra.gmra.mxu0 %vm454_vm1, %v441_v3  ;;  %v443_v10 = vpack.c.bf16 %v442_v9, %v442_v9  ;;  %s1394_s12 = scalar_lea.vmem %s956_s22, 128  ;;  %p1854_p1 = scmp.ne.s32.totalorder %s1836_s11, 0 }
  0x63   : > { %1179 = vmatpush3.bf16.msra.mxu0 %v1297_v4  ;;  %1180 = vmatprep.mubr.msk.bf16.mxu0 %vm1488_vm0, %v1487_v0  ;;  %p1395_p3 = scmp.ne.s32.totalorder %s956_s22, %s1394_s12  ;;  %s1491_s27 = smov [#allocation12]  }
  0x64   : > { %1190 = vmatprep.subr.bf16.mxu0 %v1487_v0  ;;  %1175 = vmatmul.mubr.msk.bf16.vlgmr.msra.gmra.mxu1 %vm517_vm2, %v443_v10  ;;  %s1398_s13 = sshll.u32 %s1491_s27, 4  ;;  %s1399_s13 = int_to_ptr.vmem [resolvable:$false] %s1398_s13 }
  0x65   : > { %1186 = vmatprep.mubr.msk.bf16.mxu1 %vm1488_vm0, %v1487_v0  ;;  %p1396_p4 = pnand %p1395_p3, %p1854_p1  ;;  %s1400_s6 = scalar_lea.vmem %s1399_s13, 256 }
  0x66   : > { %p1401_p9 = scmp.lt.s32.totalorder %s956_s22, %s1399_s13  ;;  %p1402_p12 = scmp.lt.s32.totalorder %s1400_s6, %s1394_s12 }
  0x67   : > { %s953_s19 = scalar_lea.hbm %s1853_s21, %s1143_s8  ;;  %p1397_p6 = pneg %p1396_p4 }
  0x68   : > { %p1403_p0 = por %p1402_p12, %p1401_p9 }
  0x6a   : > { %1181 = vmatmul.mubr.msk.bf16.vlgmr.msra.gmra.mxu0 %vm454_vm1, %v564_v6  ;;  %p1404_p7 = pnand %p1403_p0, %p1397_p6 }
  0x6b   : > { %1192 = vmatprep.mubr.msk.bf16.mxu0 %vm1488_vm0, %v1487_v0 }
 0x122   : > { %v492_v12 = vpop.f32.mrf.mxu0 }
 0x123   : > { %v493_v13 = vadd.f32 %v1118_v11, %v492_v12 }
 0x124   : > { %v1168_v14 = vpop.f32.mrf.mxu0  ;;  %v555_v32 = vpop.f32.mrf.mxu1 }
 0x125   : > { %v498_v15 = vpack.c.bf16 %v493_v13, %v493_v13  ;;  %v556_v33 = vadd.f32 %v1121_v31, %v555_v32 }
 0x126   : > { %v495_v16 = vpop.f32.mrf.mxu0  ;;  %v1176_v34 = vpop.f32.mrf.mxu1 }
 0x127   : > { %500 = vst.msk [vmem:[#allocation3] sm:$0xf] %vm499_vm3, %v498_v15  ;;  %v561_v35 = vpack.c.bf16 %v556_v33, %v556_v33  ;;  %v1141_v33 = vld [vmem:[#allocation11 + $0x5] ss:$0 sm:$0xff] }
 0x128   : > { %v1169_v17 = vpop.f32.mrf.mxu0  ;;  %v558_v36 = vpop.f32.mrf.mxu1 }
 0x129   : > { %562 = vst.msk [vmem:[#allocation4] sm:$0xf] %vm499_vm3, %v561_v35 }
 0x12a   : > { %v613_v19 = vpop.f32.mrf.mxu0  ;;  %v1177_v37 = vpop.f32.mrf.mxu1 }
 0x12b   : > { %v614_v20 = vadd.f32 %v1125_v18, %v613_v19 }
 0x12c   : > { %v1182_v21 = vpop.f32.mrf.mxu0 }
 0x12d   : > { %v619_v22 = vmul.f32 0.35355338, %v614_v20 }
 0x12e   : > { %v616_v23 = vpop.f32.mrf.mxu0  ;;  %v625_v24 = vld [vmem:[#allocation3] sm:$0xf] }
 0x12f   : > { %v1300_v25 = vld [vmem:[#allocation3] ss:$0 sps:$4 sm:$0xff]   ;;  %v620_v26 = vpack.c.bf16 %v619_v22, %v619_v22  ;;  %v638_v27 = vsel %vm633_vm4, %v625_v24, 0 }
 0x130   : > { %v1183_v28 = vpop.f32.mrf.mxu0  ;;  %1185 = vmatpush3.bf16.xpose.msra.mxu1 %v638_v27  ;;  %753 = vrot.lane.b32.xlu0 %v1300_v25, %s1489_s10  ;;  %v626_v38 = vld [vmem:[#allocation4] sm:$0xf] }
 0x131   : > { %622 = vst.msk [vmem:[#allocation2] sm:$0xf] %vm499_vm3, %v620_v26  ;;  %1196 = vmatprep.subr.bf16.mxu1 %v1487_v0  ;;  %v697_v39 = vsel %vm695_vm5, %v626_v38, 0  ;;  %v1302_v3 = vld [vmem:[#allocation4] ss:$0 sps:$4 sm:$0xff]   ;;  %v927_v28 = vld [vmem:[%s1681_s7] sm:$0xff] }
 0x132   : > { %1191 = vmatpush3.bf16.msra.mxu0 %v697_v39  ;;  %v1137_v26 = vld [vmem:[#allocation11 + $0x3] ss:$0 sm:$0xff]  ;;  %s941_s7 = scalar_lea.sflag [#allocation8], %s1675_s3 }
 0x133   : > { %1202 = vmatprep.subr.bf16.mxu0 %v1487_v0 }
 0x138   : > { %v624_v29 = vld [vmem:[#allocation2] sm:$0xf] }
 0x139   : > { %v1301_v30 = vld [vmem:[#allocation2] ss:$0 sps:$4 sm:$0xff]   ;;  %1187 = vmatmul.mubr.msk.bf16.vlgmr.msra.gmra.mxu1 %vm633_vm4, %v624_v29 }
 0x13a   : > { %748 = vrot.lane.b32.xlu0 %v1301_v30, %s1489_s10  ;;  %1198 = vmatprep.mubr.msk.bf16.mxu1 %vm1488_vm0, %v1487_v0  ;;  %v1140_v30 = vld [vmem:[#allocation11 + $0x4] ss:$0 sm:$0xff] }
 0x1a2   : > { %v754_v40 = vpop.permute.xlu0 %753 }
 0x1a3   : > { %v759_v41 = vsel %vm633_vm4, %v754_v40, 0 }
 0x1a4   : > { %1197 = vmatpush3.bf16.xpose.msra.mxu1 %v759_v41 }
 0x1a5   : > { %1208 = vmatprep.subr.bf16.mxu1 %v1487_v0 }
 0x1ac   : > { %v749_v42 = vpop.permute.xlu0 %748 }
 0x1ad   : > { %1199 = vmatmul.mubr.msk.bf16.vlgmr.msra.gmra.mxu1 %vm633_vm4, %v749_v42 }
 0x1ae   : > { %1210 = vmatprep.mubr.msk.bf16.mxu1 %vm1488_vm0, %v1487_v0 }
 0x1f9   : > { %v674_v44 = vpop.f32.mrf.mxu1 }
 0x1fa   : > { %v675_v45 = vadd.f32 %v1128_v43, %v674_v44 }
 0x1fb   : > { %v1188_v46 = vpop.f32.mrf.mxu1 }
 0x1fc   : > { %v680_v47 = vsel %vm633_vm4, %v675_v45, -inf }
 0x1fd   : > { %681 = vmax.xlane.f32.xlu1 %v680_v47  ;;  %v677_v48 = vpop.f32.mrf.mxu1 }
 0x1ff   : > { %v1189_v49 = vpop.f32.mrf.mxu1 }
 0x26d   : > { %v795_v50 = vpop.f32.mrf.mxu1 }
 0x26e   : > { %v796_v51 = vadd.f32 %v1128_v43, %v795_v50 }
 0x26f   : > { %v1200_v52 = vpop.f32.mrf.mxu1 }
 0x270   : > { %v801_v53 = vsel %vm633_vm4, %v796_v51, -inf }
 0x271   : > { %802 = vmax.xlane.f32.xlu1 %v801_v53  ;;  %v798_v54 = vpop.f32.mrf.mxu1 }
 0x273   : > { %v1201_v55 = vpop.f32.mrf.mxu1 }
 0x286   : > { %v682_v56 = vpop.xlane.xlu1 %681 }
 0x287   : > { %v683_v57 = vsub.f32 %v675_v45, %v682_v56 }
 0x289   : > { %v684_v58 = vmul.f32 1.442695, %v683_v57 }
 0x28b   : > { %1304 = vpow2.f32 %v684_v58 }
 0x298   : > { %v1305_v59 = vpop.eup %1304 }
 0x299   : > { %v686_v60 = vsel %vm633_vm4, %v1305_v59, 0.0 }
 0x29a   : > { %687 = vadd.xlane.f32.xlu0 %v686_v60 }
 0x2fa   : > { %v803_v61 = vpop.xlane.xlu1 %802 }
 0x2fb   : > { %v804_v62 = vsub.f32 %v796_v51, %v803_v61 }
 0x2fd   : > { %v805_v63 = vmul.f32 1.442695, %v804_v62 }
 0x2ff   : > { %1306 = vpow2.f32 %v805_v63 }
 0x30c   : > { %v1307_v1 = vpop.eup %1306 }
 0x30d   : > { %v807_v2 = vsel %vm633_vm4, %v1307_v1, 0.0 }
 0x30e   : > { %808 = vadd.xlane.f32.xlu1 %v807_v2 }
 0x31f   : > { %816 = vrot.lane.b32.xlu1 %v1302_v3, %s1489_s10 }
 0x323   : > { %v688_v4 = vpop.xlane.xlu0 %687 }
 0x324   : > { %1308 = vrcp.f32 %v688_v4 }
 0x331   : > { %v1309_v5 = vpop.eup %1308 }
 0x332   : > { %v690_v6 = vmul.f32 %v1309_v5, %v1305_v59 }
 0x334   : > { %v691_v7 = vpack.c.bf16 %v690_v6, %v690_v6 }
 0x336   : > { %1193 = vmatmul.mubr.msk.bf16.vlgmr.msra.gmra.mxu0 %vm633_vm4, %v691_v7 }
 0x337   : > { %1204 = vmatprep.mubr.msk.bf16.mxu0 %vm1488_vm0, %v1487_v0  ;;  %v1303_v0 = vld [vmem:[%s1820_s5 + $0x20] sm:$0xff]  }
 0x338   : > { %1209 = vmatpush3.bf16.msra.mxu1 %v1303_v0 }
 0x397   : > { %v809_v8 = vpop.xlane.xlu1 %808 }
 0x398   : > { %1310 = vrcp.f32 %v809_v8 }
 0x39b   : > { %v817_v9 = vpop.permute.xlu1 %816 }
 0x39c   : > { %v822_v10 = vsel %vm695_vm5, %v817_v9, 0 }
 0x39d   : > { %1203 = vmatpush3.bf16.msra.mxu0 %v822_v10 }
 0x3a5   : > { %v1311_v11 = vpop.eup %1310 }
 0x3a6   : > { %v811_v12 = vmul.f32 %v1311_v11, %v1307_v1 }
 0x3a8   : > { %v812_v13 = vpack.c.bf16 %v811_v12, %v811_v12 }
 0x3aa   : > { %1205 = vmatmul.mubr.msk.bf16.vlgmr.msra.gmra.mxu0 %vm633_vm4, %v812_v13 }
 0x3f6   : > { %v733_v14 = vpop.f32.mrf.mxu0 }
 0x3f7   : > { %v739_v15 = vpack.c.bf16 %v733_v14, %v733_v14 }
 0x3f8   : > { %v1194_v16 = vpop.f32.mrf.mxu0 }
 0x3f9   : > { %741 = vst.msk [vmem:[#allocation5] sm:$0xf] %vm740_vm6, %v739_v15 }
 0x3fa   : > { %v736_v17 = vpop.f32.mrf.mxu0 }
 0x3fc   : > { %v1195_v18 = vpop.f32.mrf.mxu0 }
 0x46a   : > { %v858_v19 = vpop.f32.mrf.mxu0 }
 0x46b   : > { %v1146_v20 = vpack.c.bf16 %v858_v19, %v858_v19 }
 0x46c   : > { %v1206_v21 = vpop.f32.mrf.mxu0 }
 0x46d   : > { %868 = vrot.lane.b32.xlu1 %v1146_v20, %s1490_s14 }
 0x46e   : > { %v861_v22 = vpop.f32.mrf.mxu0 }
 0x470   : > { %v1207_v23 = vpop.f32.mrf.mxu0 }
 0x4df   : > { %v869_v24 = vpop.permute.xlu1 %868 }
 0x4e0   : > { %872 = vst.msk [vmem:[#allocation5] sm:$0xf] %vm871_vm7, %v869_v24 }
 0x4e7   : > { %v873_v25 = vld [vmem:[#allocation5] sm:$0xf] }
 0x4e8   : > { %1211 = vmatmul.mubr.msk.bf16.vlgmr.msra.gmra.mxu1 %vm454_vm1, %v873_v25 }
 0x5a8   : > { %v921_v27 = vpop.f32.mrf.mxu1 }
 0x5a9   : > { %v922_v29 = vadd.f32 %v1137_v26, %v921_v27 }
 0x5aa   : > { %v1212_v31 = vpop.f32.mrf.mxu1 }
 0x5ab   : > { %v928_v32 = vadd.f32 %v927_v28, %v922_v29 }
 0x5ac   : > { %v924_v34 = vpop.f32.mrf.mxu1 }
 0x5ad   : > { %v933_v35 = vmul.f32 %v1140_v30, %v928_v32 }
 0x5ae   : > { %v1213_v36 = vpop.f32.mrf.mxu1 }
 0x5af   : > { %v938_v37 = vadd.f32 %v1141_v33, %v933_v35 }
 0x5b1   : > { %939 = vst.msk [vmem:[%s403_s17] sm:$0xff] %vm454_vm1, %v938_v37 }
 0x5b2   : > { %1407 = shalt.err (!%p1404_p7)
}
 0x5b3   : > { %s1408_s16 = scalar_lea.hbm %s953_s19, 128  ;;  %s1412_s15 = scalar_lea.hbm %s1853_s21, 256 }
 0x5b4   : > { %p1409_p8 = scmp.ne.s32.totalorder %s953_s19, %s1408_s16  ;;  %p1413_p2 = scmp.lt.s32.totalorder %s953_s19, %s1853_s21 }
 0x5b5   : > { %p1414_p11 = scmp.lt.s32.totalorder %s1412_s15, %s1408_s16 }
 0x5b6   : > { %p1410_p10 = pnand %p1409_p8, %p1854_p1 }
 0x5b7   : > { %p1415_p13 = por %p1414_p11, %p1413_p2 }
 0x5b8   : > { %p1411_p5 = pneg %p1410_p10 }
 0x5ba   : > { %p1416_p3 = pnand %p1415_p13, %p1411_p5 }
 0x5bc   : > { %1419 = shalt.err (!%p1416_p3)
}
 0x5bd   : > { %1222 = dma.vmem_to_hbm [thread:$0]  (%p1854_p1), %s956_s22, 128, %s953_s19, %s941_s7  }
 0x5be PF: > { %s1855_s20 = sld [smem:[#allocation17_spill]]  ;;  %p1858_p6 = scmp.ge.s32.totalorder %s1482_s29, 2 }
 0x5bf   : > { %s1856_s18 = sld [smem:[#allocation18_spill]] }
 0x5c4   : > { %s967_s14 = sand.u32 1, %s1855_s20  }
 0x5c5   : > { %p1857_p4 = scmp.ne.s32.totalorder %s1856_s18, 0  ;;  %s968_s8 = scalar_lea.sflag [#allocation8], %s967_s14 }
 0x5c7   : > { %p1236_p9 = pnand %p1858_p6, %p1857_p4 }
 0x5c9   : > { %p1237_p12 = pneg %p1236_p9 }
 0x5cb   : > { %1457 = dma.done.wait (%p1237_p12), %s968_s8, 128  }
 0x5cc   : > { %1459 = vsyncadd (%p1237_p12), %s968_s8, 4294967168  ;;  %s26_s29 = sadd.s32 1, %s1482_s29   ;;  %s1859_s17 = sld [smem:[#allocation20_spill]] }
 0x5cd   : > { %p23_p0 = scmp.ge.s32.totalorder %s26_s29, 4   ;;  %s1860_s11 = sld [smem:[#allocation19_spill]] }
 0x5ce   : > { %s1861_s24 = smov %s1466_s25  ;;  %s1862_s25 = smov %s1470_s26 }
 0x5cf   : > { %s1864_s27 = smov %s1478_s28  ;;  %25 = sbr.rel (!%p23_p0) target bundleno = 12 (0xc), region = 123 }
 0x5d2   : > { %s1863_s26 = smov %s1859_s17 }
 0x5d3   : > { %s1865_s28 = smov %s1860_s11 }
 0x5d4   :  { %973 = vsyncpa [#allocation7], 1 }
 0x5d5   :  { %975 = vsyncpa [#allocation7 + $0x1], 1 }
 0x5d6   :  { %976 = vsyncpa [#allocation10], 1 }
 0x5d7   :  { %978 = vsyncpa [#allocation10 + $0x1], 1 }
 0x5d8   :  { %979 = vsyncpa [#allocation8], 1 }
 0x5d9   :  { %981 = vsyncpa [#allocation8 + $0x1], 1 }

</bundles_post_ra>
